<compile_context>
chip_gen: v7x
topology: tpu7x:2x2x1
jax: 0.10.0
libtpu: 0.0.40
codegen_flags: <defaults>
</compile_context>

<pallas_src>
import functools
import math

import jax
import jax.numpy as jnp
from jax.experimental import pallas as pl
from jax.experimental.pallas import tpu as pltpu

MARGIN = 0.5
SCALE = 30.0
COS_M = math.cos(MARGIN)
SIN_M = math.sin(MARGIN)
BN_EPS = 1e-5
NORM_EPS = 1e-12


def _round_up(x, m):
    return (x + m - 1) // m * m


def _choose_frame_tile(T):
    """Largest multiple-of-8 divisor of T that is <= 256, else the full T."""
    if T <= 256:
        return T
    for tt in range(256, 7, -8):
        if T % tt == 0:
            return tt
    return T


def _choose_batch_tile(B, cap=128):
    """Largest multiple-of-8 divisor of B (capped), preferring >=2 grid steps (v7x megacore)."""
    if B <= 8:
        return B
    cands = [bt for bt in range(8, min(B, cap) + 1, 8) if B % bt == 0]
    if not cands:
        return B
    bt = max(cands)
    if B // bt < 2:
        smaller = [c for c in cands if c < bt]
        if smaller:
            bt = max(smaller)
    return bt


def _vmem_limit_bytes():
    try:
        cap = getattr(pltpu.get_tpu_info(), "vmem_capacity_bytes", None) or (64 << 20)
    except Exception:
        cap = 64 << 20
    # ~3/4 of physical VMEM: ~48 MiB on v7x (64 MiB/core), ~96 MiB on v5e/v6e (128 MiB/core).
    return max(32 << 20, min(cap * 3 // 4, 100 << 20))


def _const_spec(shape, index_map):
    """BlockSpec for a weight whose block never changes across the grid: single-buffered."""
    try:
        return pl.BlockSpec(shape, index_map, pipeline_mode=pl.Buffered(1))
    except Exception:  # older jax without BlockSpec.pipeline_mode / pl.Buffered
        return pl.BlockSpec(shape, index_map)


# ----------------------------------------------------------------------------------------
# Kernel 1: attention pooling with per-sample online softmax over frame chunks.
# ----------------------------------------------------------------------------------------
def _attn_pool_kernel(x_ref,                                # (1, Tt, H) bf16 frame features
                      aw1t_ref, ab1_ref, aw2_ref, ab2_ref,  # attention-pool params
                      pooled_ref,                           # out: (1, 1, H) f32
                      m_sc, d_sc, num_sc):                  # (1,1), (1,1), (1,H) f32 scratch
    f32 = jnp.float32
    j = pl.program_id(1)

    @pl.when(j == 0)
    def _init():
        m_sc[...] = jnp.full(m_sc.shape, -jnp.inf, f32)
        d_sc[...] = jnp.zeros(d_sc.shape, f32)
        num_sc[...] = jnp.zeros(num_sc.shape, f32)

    x = x_ref[0]                                                         # (Tt, H) bf16
    h1 = jnp.tanh(jnp.dot(x, aw1t_ref[...], preferred_element_type=f32) + ab1_ref[...])
    # TODO(synk): if profiling shows XLU saturation, this lane reduce can become a
    #             (Tt, H) x (H, 128) matmul against a zero-padded aw2 column block.
    s = jnp.sum(h1 * aw2_ref[...], axis=-1, keepdims=True) + ab2_ref[...]  # (Tt, 1) f32

    # Online softmax with a per-sample running max (never underflows: denom >= 1 at the end).
    m_old = m_sc[...]                                                     # (1, 1)
    m_new = jnp.maximum(m_old, jnp.max(s, axis=0, keepdims=True))
    rescale = jnp.exp(m_old - m_new)                                      # <= 1
    p = jnp.exp(s - m_new)                                                # (Tt, 1), <= 1
    d_sc[...] = rescale * d_sc[...] + jnp.sum(p, axis=0, keepdims=True)
    num_sc[...] = rescale * num_sc[...] + jnp.sum(p * x, axis=0, keepdims=True)
    m_sc[...] = m_new

    @pl.when(j == pl.num_programs(1) - 1)
    def _finalize():
        pooled_ref[0] = num_sc[...] / d_sc[...]        # exact divide (feeds BatchNorm)


# ----------------------------------------------------------------------------------------
# Kernel 2: projection -> BN(running stats) -> PReLU -> Linear -> L2 norm -> ArcFace + CE.
# ----------------------------------------------------------------------------------------
def _head_kernel(num_classes,
                 pooled_ref,                                  # (Bt, H) f32
                 pw1t_ref, pb1_ref, gamma_ref, beta_ref,      # projection Linear1 + BN affine
                 rmean_ref, rvar_ref, alpha_ref,              # BN running stats + PReLU alpha
                 pw2t_ref, pb2_ref,                           # projection Linear2 (E -> Ep)
                 afwt_ref,                                    # ArcFace weight (normalized, bf16)
                 labels_ref,                                  # (Bt, 1) int32
                 emb_ref,                                     # out: (Bt, Ep) bf16
                 loss_ref):                                   # out: (Bt, 1) f32 per-sample CE
    f32, bf16 = jnp.float32, jnp.bfloat16
    bt = pooled_ref.shape[0]
    Cp = afwt_ref.shape[1]

    pooled = pooled_ref[...]
    h = jnp.dot(pooled.astype(bf16), pw1t_ref[...], preferred_element_type=f32) + pb1_ref[...]
    h = (h - rmean_ref[...]) * jax.lax.rsqrt(rvar_ref[...] + BN_EPS) * gamma_ref[...] + beta_ref[...]
    h = jnp.where(h >= 0.0, h, alpha_ref[...] * h)                        # PReLU
    emb = jnp.dot(h.astype(bf16), pw2t_ref[...], preferred_element_type=f32) + pb2_ref[...]

    # L2 normalize (F.normalize, eps=1e-12); padded embedding columns are zero.
    ss = jnp.sum(emb * emb, axis=-1, keepdims=True)
    emb = emb * jax.lax.rsqrt(jnp.maximum(ss, NORM_EPS * NORM_EPS))
    emb_ref[...] = emb.astype(emb_ref.dtype)                              # bf16 writeback

    # ArcFace margin + per-sample cross entropy (class weights pre-normalized in wrapper).
    cos = jnp.dot(emb.astype(bf16), afwt_ref[...], preferred_element_type=f32)   # (Bt, Cp)
    cos = jnp.clip(cos, -1.0 + 1e-7, 1.0 - 1e-7)
    sin = jnp.sqrt(1.0 - cos * cos)
    cos_m = cos * COS_M - sin * SIN_M            # cos(theta + m); no easy-margin fallback
    col = jax.lax.broadcasted_iota(jnp.int32, (bt, Cp), 1)
    one_hot = (col == labels_ref[...]).astype(f32)
    logits = SCALE * (one_hot * cos_m + (1.0 - one_hot) * cos)
    logits = jnp.where(col < num_classes, logits, -1e30)                  # mask padded classes
    lmax = jnp.max(logits, axis=-1, keepdims=True)
    lse = lmax + jnp.log(jnp.sum(jnp.exp(logits - lmax), axis=-1, keepdims=True))
    tgt = jnp.sum(one_hot * logits, axis=-1, keepdims=True)
    loss_ref[...] = lse - tgt


def speaker_verification_forward(frame_features, labels, params, *,
                                 batch_tile=None, frame_tile=None):
    """frame_features: (B, T, H), labels: (B,) int. Returns (embeddings (B, E) f32, mean loss)."""
    B, T, H = frame_features.shape
    E = params["pw2"].shape[0]
    C = params["afw"].shape[0]
    f32, bf16 = jnp.float32, jnp.bfloat16

    Ep = _round_up(E, 128)          # lane-dense embedding block
    Cp = _round_up(C, 128)          # lane-dense ArcFace logits
    vmem_limit = _vmem_limit_bytes()

    Tt = _choose_frame_tile(T) if frame_tile is None else frame_tile
    Bt = _choose_batch_tile(B) if batch_tile is None else batch_tile
    assert T % Tt == 0 and B % Bt == 0, "tiles must divide (T, B)"

    # ---- parameter glue: transpose to [in, out], zero-pad E/C, cast big matrices to bf16 ----
    aw1t = params["aw1"].T.astype(bf16)                            # (H, H)
    ab1 = params["ab1"].reshape(1, H).astype(f32)
    aw2 = params["aw2"].reshape(1, H).astype(f32)                  # Linear(H, 1).weight is (1, H)
    ab2 = params["ab2"].reshape(1, 1).astype(f32)
    pw1t = params["pw1"].T.astype(bf16)                            # (H, H)
    pb1 = params["pb1"].reshape(1, H).astype(f32)
    gamma = params["gamma"].reshape(1, H).astype(f32)
    beta = params["beta"].reshape(1, H).astype(f32)
    rmean = params["rmean"].reshape(1, H).astype(f32)
    rvar = params["rvar"].reshape(1, H).astype(f32)
    alpha = jnp.asarray(params["alpha"], f32).reshape(1, 1)
    pw2t = jnp.zeros((H, Ep), bf16).at[:, :E].set(params["pw2"].T.astype(bf16))
    pb2 = jnp.zeros((1, Ep), f32).at[:, :E].set(params["pb2"].reshape(1, E).astype(f32))

    # ArcFace class weights: row-normalize ONCE (hoisted out of the kernel), transpose to
    # (E, C), zero-pad to lane-aligned (Ep, Cp), and store bf16: the cosine matmul accumulates
    # in f32, avoids the MXU 3-pass f32 decomposition, and halves afwt VMEM/DMA.
    afw = params["afw"].astype(f32)
    afw_n = afw / jnp.maximum(jnp.linalg.norm(afw, axis=1, keepdims=True), NORM_EPS)
    afwt = jnp.zeros((Ep, Cp), bf16).at[:E, :C].set(afw_n.T.astype(bf16))

    x3 = frame_features.astype(bf16)                               # (B, T, H)
    labels2d = labels.reshape(B, 1).astype(jnp.int32)

    # ---------------- call 1: attention pooling over (batch, frame-chunk) grid --------------
    c2 = lambda i, j: (0, 0)
    pool_spec = pltpu.PrefetchScalarGridSpec(
        num_scalar_prefetch=0,
        grid=(B, T // Tt),
        in_specs=[
            pl.BlockSpec((1, Tt, H), lambda i, j: (i, j, 0)),      # streaming frame features
            _const_spec((H, H), c2), _const_spec((1, H), c2),      # attention W1, b1
            _const_spec((1, H), c2), _const_spec((1, 1), c2),      # attention w2, b2
        ],
        out_specs=pl.BlockSpec((1, 1, H), lambda i, j: (i, 0, 0)),
        scratch_shapes=[
            pltpu.VMEM((1, 1), f32),                               # running per-sample max
            pltpu.VMEM((1, 1), f32),                               # running softmax denominator
            pltpu.VMEM((1, H), f32),                               # running weighted frame sum
        ],
    )
    pooled3 = pl.pallas_call(
        _attn_pool_kernel,
        out_shape=jax.ShapeDtypeStruct((B, 1, H), f32),
        grid_spec=pool_spec,
        compiler_params=pltpu.CompilerParams(
            dimension_semantics=("parallel", "arbitrary"),
            vmem_limit_bytes=vmem_limit,
        ),
    )(x3, aw1t, ab1, aw2, ab2)
    pooled = pooled3.reshape(B, H)

    # ---------------- call 2: projection + ArcFace + CE on large batch tiles -----------------
    c1 = lambda i: (0, 0)
    head_spec = pltpu.PrefetchScalarGridSpec(
        num_scalar_prefetch=0,
        grid=(B // Bt,),
        in_specs=[
            pl.BlockSpec((Bt, H), lambda i: (i, 0)),               # pooled embeddings
            _const_spec((H, H), c1), _const_spec((1, H), c1),      # proj W1, b1
            _const_spec((1, H), c1), _const_spec((1, H), c1),      # BN gamma, beta
            _const_spec((1, H), c1), _const_spec((1, H), c1),      # BN running mean, var
            _const_spec((1, 1), c1),                               # PReLU alpha
            _const_spec((H, Ep), c1), _const_spec((1, Ep), c1),    # proj W2, b2
            _const_spec((Ep, Cp), c1),                             # ArcFace weight (normalized)
            pl.BlockSpec((Bt, 1), lambda i: (i, 0)),               # labels
        ],
        out_specs=[
            pl.BlockSpec((Bt, Ep), lambda i: (i, 0)),              # embeddings (lane-dense, bf16)
            pl.BlockSpec((Bt, 1), lambda i: (i, 0)),               # per-sample loss
        ],
    )
    emb, loss = pl.pallas_call(
        functools.partial(_head_kernel, C),
        out_shape=(jax.ShapeDtypeStruct((B, Ep), bf16),
                   jax.ShapeDtypeStruct((B, 1), f32)),
        grid_spec=head_spec,
        compiler_params=pltpu.CompilerParams(
            dimension_semantics=("parallel",),
            vmem_limit_bytes=vmem_limit,
        ),
    )(pooled, pw1t, pb1, gamma, beta, rmean, rvar, alpha, pw2t, pb2, afwt, labels2d)

    return emb[:, :E].astype(f32), jnp.mean(loss)


def reference_forward(x, labels, p):
    """Pure-JAX f32 reference mirroring the PyTorch module semantics (BN in eval mode)."""
    h1 = jnp.tanh(x @ p["aw1"].T + p["ab1"])
    scores = h1 @ p["aw2"].reshape(1, -1).T + p["ab2"]             # (B, T, 1)
    w = jax.nn.softmax(scores, axis=1)
    pooled = jnp.sum(w * x, axis=1)                                # (B, H)
    h = pooled @ p["pw1"].T + p["pb1"]
    h = (h - p["rmean"]) / jnp.sqrt(p["rvar"] + BN_EPS) * p["gamma"] + p["beta"]
    h = jnp.where(h >= 0.0, h, p["alpha"] * h)
    emb = h @ p["pw2"].T + p["pb2"]
    emb = emb / jnp.maximum(jnp.linalg.norm(emb, axis=1, keepdims=True), NORM_EPS)
    wn = p["afw"] / jnp.maximum(jnp.linalg.norm(p["afw"], axis=1, keepdims=True), NORM_EPS)
    cos = jnp.clip(emb @ wn.T, -1.0 + 1e-7, 1.0 - 1e-7)
    theta = jnp.arccos(cos)
    C = cos.shape[1]
    one_hot = (jnp.arange(C)[None, :] == labels[:, None]).astype(jnp.float32)
    theta_m = theta + MARGIN * one_hot
    logits = SCALE * (one_hot * jnp.cos(theta_m) + (1.0 - one_hot) * cos)
    lse = jax.scipy.special.logsumexp(logits, axis=1)
    tgt = jnp.take_along_axis(logits, labels[:, None], axis=1)[:, 0]
    return emb, jnp.mean(lse - tgt)


if __name__ == "__main__":
    B, T, H, E, C = 2, 8, 32, 16, 8
    key = jax.random.PRNGKey(0)
    ks = jax.random.split(key, 16)
    f32 = jnp.float32

    # Synthetic stand-in for wav2vec2 last_hidden_state.
    frame_features = jax.random.normal(ks[0], (B, T, H), f32)
    labels = jax.random.randint(ks[1], (B,), 0, C)

    params = {
        "aw1": 0.2 * jax.random.normal(ks[2], (H, H), f32),
        "ab1": jnp.zeros((H,), f32),
        "aw2": 0.2 * jax.random.normal(ks[3], (1, H), f32),
        "ab2": jnp.zeros((1,), f32),
        "pw1": 0.2 * jax.random.normal(ks[4], (H, H), f32),
        "pb1": 0.05 * jax.random.normal(ks[5], (H,), f32),
        "gamma": 1.0 + 0.1 * jax.random.normal(ks[6], (H,), f32),
        "beta": 0.05 * jax.random.normal(ks[7], (H,), f32),
        "rmean": 0.1 * jax.random.normal(ks[8], (H,), f32),
        "rvar": jax.random.uniform(ks[9], (H,), f32, 0.5, 1.5),
        "alpha": jnp.array(0.25, f32),            # PReLU default init
        "pw2": 0.2 * jax.random.normal(ks[10], (E, H), f32),
        "pb2": 0.05 * jax.random.normal(ks[11], (E,), f32),
        "afw": 0.2 * jax.random.normal(ks[12], (C, E), f32),
    }

    emb, loss = speaker_verification_forward(frame_features, labels, params)
    jax.block_until_ready((emb, loss))

    emb_ref, loss_ref = reference_forward(frame_features, labels, params)
    assert emb.shape == (B, E)
    assert jnp.allclose(emb, emb_ref, atol=5e-2, rtol=5e-2), "embedding mismatch"
    # bf16 matmuls (including the ArcFace cosine matmul) plus the 30x scale amplify rounding.
    assert jnp.allclose(loss, loss_ref, atol=2e-1, rtol=1e-1), "loss mismatch"
    print("KERNEL_OK")
</pallas_src>

<mosaic_0001>
module attributes {stable_mosaic.version = 11 : i64} {
  func.func @_attn_pool_kernel(%arg0: i32, %arg1: i32, %arg2: memref<1x8x32xbf16, #tpu.memory_space<vmem>>, %arg3: memref<32x32xbf16, #tpu.memory_space<vmem>>, %arg4: memref<1x32xf32, #tpu.memory_space<vmem>>, %arg5: memref<1x32xf32, #tpu.memory_space<vmem>>, %arg6: memref<1x1xf32, #tpu.memory_space<vmem>>, %arg7: memref<1x1x32xf32, #tpu.memory_space<vmem>>, %arg8: memref<1x1xf32, #tpu.memory_space<vmem>>, %arg9: memref<1x1xf32, #tpu.memory_space<vmem>>, %arg10: memref<1x32xf32, #tpu.memory_space<vmem>>) attributes {dimension_semantics = [#tpu.dimension_semantics<parallel>, #tpu.dimension_semantics<arbitrary>], iteration_bounds = array<i64: 2, 1>, scalar_prefetch = 0 : i64, scratch_operands = 3 : i64, tpu.core_type = #tpu.core_type<tc>, window_params = [{transform_indices = @transform_0, window_bounds = array<i64: 1, 8, 32>}, {pipeline_mode = #tpu.pipeline_mode<synchronous>, transform_indices = @transform_1, window_bounds = array<i64: 32, 32>}, {pipeline_mode = #tpu.pipeline_mode<synchronous>, transform_indices = @transform_2, window_bounds = array<i64: 1, 32>}, {pipeline_mode = #tpu.pipeline_mode<synchronous>, transform_indices = @transform_3, window_bounds = array<i64: 1, 32>}, {pipeline_mode = #tpu.pipeline_mode<synchronous>, transform_indices = @transform_4, window_bounds = array<i64: 1, 1>}, {transform_indices = @transform_5, window_bounds = array<i64: 1, 1, 32>}]} {
    %c0_i32 = arith.constant 0 : i32
    %0 = arith.cmpi eq, %arg1, %c0_i32 : i32
    %1 = arith.extui %0 : i1 to i32
    %c0_i32_0 = arith.constant 0 : i32
    %2 = arith.cmpi ne, %1, %c0_i32_0 : i32
    scf.if %2 {
      %cst_29 = arith.constant 0xFF800000 : f32
      %48 = vector.broadcast %cst_29 : f32 to vector<1x1xf32>
      %c0_30 = arith.constant 0 : index
      %c0_31 = arith.constant 0 : index
      %49 = vector.load %arg8[%c0_30, %c0_31] : memref<1x1xf32, #tpu.memory_space<vmem>>, vector<1x1xf32>
      tpu.vector_store %arg8[%c0_30, %c0_31], %48 {strides = array<i32>} : memref<1x1xf32, #tpu.memory_space<vmem>>, vector<1x1xf32>,
      %cst_32 = arith.constant 0.000000e+00 : f32
      %50 = vector.broadcast %cst_32 : f32 to vector<1x1xf32>
      %c0_33 = arith.constant 0 : index
      %c0_34 = arith.constant 0 : index
      %51 = vector.load %arg9[%c0_33, %c0_34] : memref<1x1xf32, #tpu.memory_space<vmem>>, vector<1x1xf32>
      tpu.vector_store %arg9[%c0_33, %c0_34], %50 {strides = array<i32>} : memref<1x1xf32, #tpu.memory_space<vmem>>, vector<1x1xf32>,
      %cst_35 = arith.constant 0.000000e+00 : f32
      %52 = vector.broadcast %cst_35 : f32 to vector<1x32xf32>
      %c0_36 = arith.constant 0 : index
      %c0_37 = arith.constant 0 : index
      %53 = vector.load %arg10[%c0_36, %c0_37] : memref<1x32xf32, #tpu.memory_space<vmem>>, vector<1x32xf32>
      tpu.vector_store %arg10[%c0_36, %c0_37], %52 {strides = array<i32>} : memref<1x32xf32, #tpu.memory_space<vmem>>, vector<1x32xf32>,
    } else {
    }
    %c0 = arith.constant 0 : index
    %c0_1 = arith.constant 0 : index
    %c0_2 = arith.constant 0 : index
    %3 = vector.load %arg2[%c0, %c0_1, %c0_2] : memref<1x8x32xbf16, #tpu.memory_space<vmem>>, vector<1x8x32xbf16>
    %4 = vector.shape_cast %3 : vector<1x8x32xbf16> to vector<8x32xbf16>
    %c0_3 = arith.constant 0 : index
    %c0_4 = arith.constant 0 : index
    %5 = vector.load %arg3[%c0_3, %c0_4] : memref<32x32xbf16, #tpu.memory_space<vmem>>, vector<32x32xbf16>
    %cst = arith.constant dense<0.000000e+00> : vector<8x32xf32>
    %6 = tpu.matmul %4, %5, %cst {dimension_numbers = #tpu.dot_dimension_numbers<[1], [0], [0], [1], [0, 0, 1, 1], [], []>} : vector<8x32xbf16>, vector<32x32xbf16>, vector<8x32xf32> -> vector<8x32xf32>
    %c0_5 = arith.constant 0 : index
    %c0_6 = arith.constant 0 : index
    %7 = vector.load %arg4[%c0_5, %c0_6] : memref<1x32xf32, #tpu.memory_space<vmem>>, vector<1x32xf32>
    %8 = vector.broadcast %7 : vector<1x32xf32> to vector<8x32xf32>
    %9 = arith.addf %6, %8 : vector<8x32xf32>
    %10 = math.tanh %9 : vector<8x32xf32>
    %c0_7 = arith.constant 0 : index
    %c0_8 = arith.constant 0 : index
    %11 = vector.load %arg5[%c0_7, %c0_8] : memref<1x32xf32, #tpu.memory_space<vmem>>, vector<1x32xf32>
    %12 = vector.broadcast %11 : vector<1x32xf32> to vector<8x32xf32>
    %13 = arith.mulf %10, %12 : vector<8x32xf32>
    %cst_9 = arith.constant dense<0.000000e+00> : vector<8xf32>
    %14 = vector.multi_reduction <add>, %13, %cst_9 [1] : vector<8x32xf32> to vector<8xf32>
    %15 = vector.shape_cast %14 : vector<8xf32> to vector<8x1xf32>
    %c0_10 = arith.constant 0 : index
    %c0_11 = arith.constant 0 : index
    %16 = vector.load %arg6[%c0_10, %c0_11] : memref<1x1xf32, #tpu.memory_space<vmem>>, vector<1x1xf32>
    %17 = vector.broadcast %16 : vector<1x1xf32> to vector<8x1xf32>
    %18 = arith.addf %15, %17 : vector<8x1xf32>
    %c0_12 = arith.constant 0 : index
    %c0_13 = arith.constant 0 : index
    %19 = vector.load %arg8[%c0_12, %c0_13] : memref<1x1xf32, #tpu.memory_space<vmem>>, vector<1x1xf32>
    %cst_14 = arith.constant dense<0xFF800000> : vector<1xf32>
    %20 = vector.multi_reduction <maximumf>, %18, %cst_14 [0] : vector<8x1xf32> to vector<1xf32>
    %21 = vector.shape_cast %20 : vector<1xf32> to vector<1x1xf32>
    %22 = arith.maximumf %19, %21 : vector<1x1xf32>
    %23 = arith.subf %19, %22 : vector<1x1xf32>
    %24 = math.exp %23 : vector<1x1xf32>
    %25 = vector.broadcast %22 : vector<1x1xf32> to vector<8x1xf32>
    %26 = arith.subf %18, %25 : vector<8x1xf32>
    %27 = math.exp %26 : vector<8x1xf32>
    %c0_15 = arith.constant 0 : index
    %c0_16 = arith.constant 0 : index
    %28 = vector.load %arg9[%c0_15, %c0_16] : memref<1x1xf32, #tpu.memory_space<vmem>>, vector<1x1xf32>
    %29 = arith.mulf %24, %28 : vector<1x1xf32>
    %cst_17 = arith.constant dense<0.000000e+00> : vector<1xf32>
    %30 = vector.multi_reduction <add>, %27, %cst_17 [0] : vector<8x1xf32> to vector<1xf32>
    %31 = vector.shape_cast %30 : vector<1xf32> to vector<1x1xf32>
    %32 = arith.addf %29, %31 : vector<1x1xf32>
    %c0_18 = arith.constant 0 : index
    %c0_19 = arith.constant 0 : index
    %33 = vector.load %arg9[%c0_18, %c0_19] : memref<1x1xf32, #tpu.memory_space<vmem>>, vector<1x1xf32>
    tpu.vector_store %arg9[%c0_18, %c0_19], %32 {strides = array<i32>} : memref<1x1xf32, #tpu.memory_space<vmem>>, vector<1x1xf32>,
    %c0_20 = arith.constant 0 : index
    %c0_21 = arith.constant 0 : index
    %34 = vector.load %arg10[%c0_20, %c0_21] : memref<1x32xf32, #tpu.memory_space<vmem>>, vector<1x32xf32>
    %35 = vector.broadcast %24 : vector<1x1xf32> to vector<1x32xf32>
    %36 = arith.mulf %35, %34 : vector<1x32xf32>
    %37 = arith.extf %4 : vector<8x32xbf16> to vector<8x32xf32>
    %38 = vector.broadcast %27 : vector<8x1xf32> to vector<8x32xf32>
    %39 = arith.mulf %38, %37 : vector<8x32xf32>
    %cst_22 = arith.constant dense<0.000000e+00> : vector<32xf32>
    %40 = vector.multi_reduction <add>, %39, %cst_22 [0] : vector<8x32xf32> to vector<32xf32>
    %41 = vector.shape_cast %40 : vector<32xf32> to vector<1x32xf32>
    %42 = arith.addf %36, %41 : vector<1x32xf32>
    %c0_23 = arith.constant 0 : index
    %c0_24 = arith.constant 0 : index
    %43 = vector.load %arg10[%c0_23, %c0_24] : memref<1x32xf32, #tpu.memory_space<vmem>>, vector<1x32xf32>
    tpu.vector_store %arg10[%c0_23, %c0_24], %42 {strides = array<i32>} : memref<1x32xf32, #tpu.memory_space<vmem>>, vector<1x32xf32>,
    %c0_25 = arith.constant 0 : index
    %c0_26 = arith.constant 0 : index
    %44 = vector.load %arg8[%c0_25, %c0_26] : memref<1x1xf32, #tpu.memory_space<vmem>>, vector<1x1xf32>
    tpu.vector_store %arg8[%c0_25, %c0_26], %22 {strides = array<i32>} : memref<1x1xf32, #tpu.memory_space<vmem>>, vector<1x1xf32>,
    %c0_i32_27 = arith.constant 0 : i32
    %45 = arith.cmpi eq, %arg1, %c0_i32_27 : i32
    %46 = arith.extui %45 : i1 to i32
    %c0_i32_28 = arith.constant 0 : i32
    %47 = arith.cmpi ne, %46, %c0_i32_28 : i32
    scf.if %47 {
      %c0_29 = arith.constant 0 : index
      %c0_30 = arith.constant 0 : index
      %48 = vector.load %arg10[%c0_29, %c0_30] : memref<1x32xf32, #tpu.memory_space<vmem>>, vector<1x32xf32>
      %c0_31 = arith.constant 0 : index
      %c0_32 = arith.constant 0 : index
      %49 = vector.load %arg9[%c0_31, %c0_32] : memref<1x1xf32, #tpu.memory_space<vmem>>, vector<1x1xf32>
      %50 = vector.broadcast %49 : vector<1x1xf32> to vector<1x32xf32>
      %51 = arith.divf %48, %50 : vector<1x32xf32>
      %c0_33 = arith.constant 0 : index
      %c0_34 = arith.constant 0 : index
      %c0_35 = arith.constant 0 : index
      %52 = vector.load %arg7[%c0_33, %c0_34, %c0_35] : memref<1x1x32xf32, #tpu.memory_space<vmem>>, vector<1x1x32xf32>
      %53 = vector.shape_cast %52 : vector<1x1x32xf32> to vector<1x32xf32>
      %54 = vector.shape_cast %51 : vector<1x32xf32> to vector<1x1x32xf32>
      tpu.vector_store %arg7[%c0_33, %c0_34, %c0_35], %54 {strides = array<i32>} : memref<1x1x32xf32, #tpu.memory_space<vmem>>, vector<1x1x32xf32>,
    } else {
    }
    return
  }
  func.func @transform_0(%arg0: i32, %arg1: i32) -> (i32, i32, i32) {
    %c0_i32 = arith.constant 0 : i32
    %c0_i32_0 = arith.constant 0 : i32
    return %arg0, %arg1, %c0_i32 : i32, i32, i32
  }
  func.func @transform_1(%arg0: i32, %arg1: i32) -> (i32, i32) {
    %c0_i32 = arith.constant 0 : i32
    %c0_i32_0 = arith.constant 0 : i32
    %c0_i32_1 = arith.constant 0 : i32
    return %c0_i32, %c0_i32_0 : i32, i32
  }
  func.func @transform_2(%arg0: i32, %arg1: i32) -> (i32, i32) {
    %c0_i32 = arith.constant 0 : i32
    %c0_i32_0 = arith.constant 0 : i32
    %c0_i32_1 = arith.constant 0 : i32
    return %c0_i32, %c0_i32_0 : i32, i32
  }
  func.func @transform_3(%arg0: i32, %arg1: i32) -> (i32, i32) {
    %c0_i32 = arith.constant 0 : i32
    %c0_i32_0 = arith.constant 0 : i32
    %c0_i32_1 = arith.constant 0 : i32
    return %c0_i32, %c0_i32_0 : i32, i32
  }
  func.func @transform_4(%arg0: i32, %arg1: i32) -> (i32, i32) {
    %c0_i32 = arith.constant 0 : i32
    %c0_i32_0 = arith.constant 0 : i32
    %c0_i32_1 = arith.constant 0 : i32
    return %c0_i32, %c0_i32_0 : i32, i32
  }
  func.func @transform_5(%arg0: i32, %arg1: i32) -> (i32, i32, i32) {
    %c0_i32 = arith.constant 0 : i32
    %c0_i32_0 = arith.constant 0 : i32
    %c0_i32_1 = arith.constant 0 : i32
    return %arg0, %c0_i32, %c0_i32_0 : i32, i32, i32
  }
}

</mosaic_0001>

<bundles_post_ra>
// kernel: tpu_custom_call.1
= control target key start
LH: loop header
LB: loop body
LE: loop exit
PB: predicated region body
PF: predicated region fallthrough
CT: control target
= control target key end

     0   :  { %s1093_s0 = inlined_call_operand.hbm [shape: bf16[2,8,32], index: 0, kind: input, shape index: {}]   ;;  %s1094_s1 = inlined_call_operand.hbm [shape: bf16[32,32], index: 1, kind: input, shape index: {}]   ;;  %s1095_s2 = inlined_call_operand.vmem [shape: f32[1,32], index: 2, kind: input, shape index: {}]   ;;  %s1096_s3 = inlined_call_operand.vmem [shape: f32[1,32], index: 3, kind: input, shape index: {}]   ;;  %s1097_s4 = inlined_call_operand.<no memory space> [shape: f32[1,1], index: 4, kind: input, shape index: {}]   ;;  %s1098_s5 = inlined_call_operand.hbm [shape: f32[2,1,32], index: 5, kind: output, shape index: {}]  }
   0x1   :  { %v10_v0 = vstv %s1097_s4 }
   0x2   :  { %11 = vst [vmem:[#allocation5] sm:$0x1] %v10_v0 }
   0x3   :  { %12 = vsyncpa [#allocation7], 0 }
   0x4   :  { %14 = vsyncpa [#allocation7 + $0x1], 0 }
   0x5   :  { %15 = vsyncpa [#allocation10], 0 }
   0x6   :  { %16 = vsyncpa [#allocation8], 0 }
   0x7   :  { %18 = vsyncpa [#allocation8 + $0x1], 0  ;;  %s856_s20 = smov 0   ;;  %s858_s21 = smov 0  }
   0x8   :  { %s860_s22 = smov 0   ;;  %s862_s23 = smov 0  }
   0x9   :  { %s864_s24 = smov 0   ;;  %s866_s25 = smov 0  }
   0xa LB: > { %s547_s4 = sadd.s32 4294967295, %s812_s25   ;;  %s548_s26 = sadd.s32 4294967294, %s812_s25   ;;  %s812_s25 = sphi %s866_s25, %s24_s25   ;;  %s808_s24 = sphi %s864_s24, %s1122_s24   ;;  %s804_s23 = sphi %s862_s23, %s1121_s23   ;;  %s800_s22 = sphi %s860_s22, %s1120_s22   ;;  %s796_s21 = sphi %s858_s21, %s1119_s21   ;;  %s792_s20 = sphi %s856_s20, %s1118_s20  }
   0xb   : > { %p58_p0 = scmp.ne.s32.totalorder %s796_s21, %s792_s20  ;;  %p890_p1 = scmp.eq.s32.totalorder %s547_s4, 0 }
   0xc   : > { %p894_p2 = scmp.eq.s32.totalorder %s547_s4, 1  ;;  %p172_p3 = scmp.eq.s32.totalorder %s548_s26, 1 }
   0xd   : > { %s1103_s27 = scalar_select %p890_p1, 1, 0 }
   0xe   : > { %s1104_s28 = scalar_select %p894_p2, 1, 0 }
   0xf   : > { %p900_p4 = por %p890_p1, %p58_p0  ;;  %p549_p5 = scmp.ge.s32.totalorder %s812_s25, 1 }
  0x10   : > { %p905_p6 = por %p172_p3, %p58_p0  ;;  %p179_p7 = scmp.lt.s32.totalorder %s812_s25, 3 }
  0x11   : > { %s1105_s29 = scalar_select %p900_p4, 1, 0 }
  0x12   : > { %s1106_s30 = scalar_select %p905_p6, 1, 0 }
  0x13   : > { %p910_p8 = pnand %p549_p5, %p179_p7  ;;  %s814_s7 = smov [#allocation9]  }
  0x14   : > { %s191_s8 = sshll.u32 %s814_s7, 4  ;;  %s36_s10 = sadd.s32 1, %s808_s24  ;;  %s192_s8 = int_to_ptr.vmem [resolvable:$true] %s191_s8 }
  0x15   : > { %s1107_s6 = scalar_select %p910_p8, 1, 0 }
  0x16   : > { %p585_p9 = pneg %p910_p8  ;;  %s668_s13 = scalar_lea.hbm %s1094_s1, 256 }
  0x17   : > { %p669_p12 = scmp.ne.s32.totalorder %s1094_s1, %s668_s13  ;;  %p675_p5 = scmp.lt.u32.totalorder %s668_s13, %s1094_s1 }
  0x18   : > { %p919_p11 = pnand %p585_p9, %p890_p1 }
  0x1a   : > { %p670_p13 = pneg %p919_p11 }
  0x1c   : > { %p671_p0 = pnand %p670_p13, %p669_p12 }
  0x1e   : > { %p672_p3 = pneg %p671_p0 }
  0x20   : > { %p677_p7 = pnand %p675_p5, %p672_p3 }
  0x22   : > { %680 = shalt.err (!%p677_p7)
}
  0x23   : > { %s681_s18 = scalar_lea.vmem %s192_s8, 256  ;;  %p689_p1 = scmp.lt.s32.totalorder %s192_s8, %s192_s8 }
  0x24   : > { %p682_p9 = scmp.ne.s32.totalorder %s192_s8, %s681_s18  ;;  %p690_p4 = scmp.lt.s32.totalorder %s681_s18, %s681_s18 }
  0x26   : > { %p684_p10 = pnand %p682_p9, %p670_p13  ;;  %p691_p8 = por %p690_p4, %p689_p1 }
  0x28   : > { %p685_p6 = pneg %p684_p10 }
  0x2a   : > { %p692_p2 = pnand %p691_p8, %p685_p6 }
  0x2c   : > { %695 = shalt.err (!%p692_p2)
}
  0x2d   : > { %s815_s19 = smov 64   ;;  %s816_s4 = smov 4  }
  0x2e   : > { %588 = dma.hbm_to_vmem [thread:$0]  (!%p919_p11), %s1094_s1, 256, %s192_s8, [#allocation10], %s815_s19, %s815_s19, %s816_s4  }
  0x2f   : > { %p38_p1 = scmp.ge.s32.totalorder %s36_s10, 2  ;;  %s45_s11 = sadd.s32 1, %s800_s22 }
  0x30   : > { %p52_p2 = scmp.ne.s32.totalorder %s800_s22, %s796_s21  ;;  %p53_p4 = scmp.eq.s32.totalorder %s812_s25, 0 }
  0x31   : > { %s1124_s10 = smov (%p38_p1, %s36_s10), 0  ;;  %p1110_p8 = scmp.ne.s32.totalorder %s1104_s28, 0 }
  0x32   : > { %p946_p6 = por %p53_p4, %p52_p2  ;;  %s40_s9 = ssub.s32 %s808_s24, %s1124_s10 }
  0x33   : > { %p952_p10 = por %p1110_p8, %p52_p2  ;;  %p598_p12 = scmp.lt.s32.totalorder %s812_s25, 2 }
  0x34   : > { %p43_p11 = scmp.eq.s32.totalorder %s40_s9, 0  ;;  %s214_s8 = sand.u32 1, %s800_s22  }
  0x35   : > { %s552_s14 = sshll.u32 %s214_s8, 2  ;;  %s553_s16 = sshll.u32 %s808_s24, 6 }
  0x36   : > { %s961_s15 = scalar_select %p43_p11, %s800_s22, %s45_s11  }
  0x37   : > { %s967_s19 = scalar_lea.hbm %s1093_s0, %s553_s16  ;;  %s218_s28 = scalar_lea.vmem [#allocation6], %s552_s14 }
  0x38   : > { %s226_s4 = sshll.u32 %s218_s28, 4  ;;  %p973_p13 = pnand %p598_p12, %p946_p6  ;;  %s969_s4 = int_to_ptr.vmem [resolvable:$true] %s226_s4 }
  0x39   : > { %s215_s7 = scalar_lea.sflag [#allocation7], %s214_s8  ;;  %s696_s11 = scalar_lea.hbm %s967_s19, 64 }
  0x3a   : > { %p697_p0 = scmp.ne.s32.totalorder %s967_s19, %s696_s11  ;;  %p698_p3 = pneg %p973_p13 }
  0x3b   : > { %s701_s16 = scalar_lea.hbm %s1093_s0, 128  ;;  %p702_p9 = scmp.lt.u32.totalorder %s967_s19, %s1093_s0 }
  0x3c   : > { %p699_p5 = pnand %p698_p3, %p697_p0  ;;  %p703_p1 = scmp.lt.u32.totalorder %s701_s16, %s696_s11 }
  0x3d   : > { %p705_p4 = scmp.lt.u32.totalorder %s696_s11, %s967_s19 }
  0x3e   : > { %p700_p7 = pneg %p699_p5  ;;  %p704_p2 = por %p703_p1, %p702_p9 }
  0x40   : > { %p706_p6 = por %p705_p4, %p704_p2 }
  0x42   : > { %p707_p8 = pnand %p706_p6, %p700_p7 }
  0x44   : > { %710 = shalt.err (!%p707_p8)
}
  0x45   : > { %s711_s8 = scalar_lea.vmem %s969_s4, 64  ;;  %s817_s18 = smov [#allocation6]  }
  0x46   : > { %p712_p12 = scmp.ne.s32.totalorder %s969_s4, %s711_s8  ;;  %s716_s28 = sshll.u32 %s817_s18, 4  ;;  %s717_s28 = int_to_ptr.vmem [resolvable:$false] %s716_s28 }
  0x47   : > { %s718_s9 = scalar_lea.vmem %s717_s28, 128  ;;  %p719_p5 = scmp.lt.s32.totalorder %s969_s4, %s717_s28 }
  0x48   : > { %p714_p11 = pnand %p712_p12, %p698_p3  ;;  %p720_p9 = scmp.lt.s32.totalorder %s718_s9, %s711_s8 }
  0x4a   : > { %p715_p0 = pneg %p714_p11  ;;  %p721_p1 = por %p720_p9, %p719_p5 }
  0x4c   : > { %p722_p2 = pnand %p721_p1, %p715_p0 }
  0x4e   : > { %725 = shalt.err (!%p722_p2)
}
  0x4f   : > { %592 = dma.hbm_to_vmem [thread:$0]  (!%p973_p13), %s967_s19, 64, %s969_s4, %s215_s7  }
  0x50   : > { %p1113_p7 = scmp.ne.s32.totalorder %s1107_s6, 0 }
  0x51   : > { %s1005_s11 = sand.u32 (!%p1113_p7), 1, %s796_s21   ;;  %p1114_p3 = scmp.ne.s32.totalorder (!%p1113_p7), %s1105_s29, 0 }
  0x52   : > { %235 = sbr.rel (%p1113_p7) target bundleno = 686 (0x2ae), region = 40  ;;  %s555_s14 = sshll.u32 (!%p1113_p7), %s1005_s11, 2 }
  0x53   : > { %s238_s16 = scalar_lea.sflag (!%p1113_p7), [#allocation7], %s1005_s11  ;;  %s241_s12 = scalar_lea.vmem (!%p1113_p7), [#allocation6], %s555_s14 }
  0x59   : > { %779 = dma.done.wait (%p1114_p3), %s238_s16, 64  }
  0x5a   : > { %781 = vsyncadd (%p1114_p3), %s238_s16, 4294967232  ;;  %p1115_p4 = scmp.ne.s32.totalorder %s1103_s27, 0 }
  0x5c   : > { %783 = dma.done.wait (%p1115_p4), [#allocation10], 256  }
  0x5d   : > { %785 = vsyncadd (%p1115_p4), [#allocation10], 4294967040  ;;  %vm276_vm0 = vcmask 0   ;;  %v818_v1 = vmov -inf   ;;  %v819_v2 = vmov 0.0   ;;  %vm820_vm1 = vmmov 0  }
  0x5e   : > { %277 = vst.msk [vmem:[#allocation2] sm:$0x1] %vm276_vm0, %v818_v1  ;;  %278 = vst.msk [vmem:[#allocation3] sm:$0x1] %vm276_vm0, %v819_v2  ;;  %569 = vmatprep.subr.bf16.mxu0 %v819_v2  ;;  %573 = vmatprep.mubr.msk.bf16.mxu0 %vm820_vm1, %v819_v2  ;;  %v658_v3 = vld [vmem:[#allocation9] sm:$0xff]   ;;  %v659_v4 = vld [vmem:[#allocation9 + $0x8] sm:$0xff]   ;;  %v383_v22 = vlaneseq }
  0x5f   : > { %570 = vmatpush3.bf16.msra.mxu0 %v658_v3  ;;  %v1019_v5 = vld [vmem:[%s241_s12] sm:$0xf]  ;;  %vm305_vm2 = vcmask 261120   ;;  %v557_v6 = vld [vmem:[%s1095_s2] ss:$0 sm:$0xff]  ;;  %v821_v16 = vmov 0  }
  0x60   : > { %571 = vmatprep.subr.bf16.mxu0 %v819_v2  ;;  %v561_v12 = vld [vmem:[%s1096_s3] ss:$0 sm:$0xff]  ;;  %657 = vset.pattern.permute.xlu1 %v821_v16  ;;  %vm279_vm3 = vcmask 253952   ;;  %v562_v17 = vld [vmem:[#allocation5] ss:$0 sm:$0xff]  ;;  %vm370_vm4 = vcmask 7168   ;;  %v414_v50 = vunpack.c.l.bf16 %v1019_v5 }
  0x61   : > { %656 = vset.pattern.permute.xlu0 %v821_v16  ;;  %280 = vst.msk [vmem:[#allocation4] sm:$0x1] %vm279_vm3, %v819_v2  ;;  %v384_v25 = vshrl.u32 %v383_v22, 7  ;;  %s563_s4 = sshll.u32 %s804_s23, 4  ;;  %s270_s26 = scalar_lea.vmem [#allocation11], %s1005_s11 }
  0x62   : > { %s462_s7 = sshll.u32 %s270_s26, 4  ;;  %s1043_s18 = scalar_lea.hbm %s1098_s5, %s563_s4  ;;  %s1045_s7 = int_to_ptr.vmem [resolvable:$true] %s462_s7 }
  0x63   : > { %572 = vmatpush3.bf16.msra.mxu0 %v659_v4  ;;  %v385_v29 = vsub.s32 0, %v384_v25  ;;  %s450_s28 = scalar_lea.sflag [#allocation8], %s1005_s11  ;;  %s726_s9 = scalar_lea.vmem %s1045_s7, 16 }
  0x64   : > { %p727_p13 = scmp.ne.s32.totalorder %s1045_s7, %s726_s9  ;;  %s822_s23 = smov [#allocation11]  }
  0x65   : > { %v369_v28 = vld [vmem:[#allocation2] sm:$0x1]  ;;  %v391_v44 = vld [vmem:[#allocation3] sm:$0x1]  ;;  %s730_s14 = sshll.u32 %s822_s23, 4  ;;  %s731_s14 = int_to_ptr.vmem [resolvable:$false] %s730_s14 }
  0x66   : > { %574 = vmatmul.mubr.msk.bf16.vlgmr.msra.gmra.mrb[0].mxu0 %vm305_vm2, %v1019_v5  ;;  %p728_p6 = pnand %p727_p13, %p952_p10  ;;  %s732_s16 = scalar_lea.vmem %s731_s14, 32 }
  0x67   : > { %p733_p12 = scmp.lt.s32.totalorder %s1045_s7, %s731_s14  ;;  %p734_p11 = scmp.lt.s32.totalorder %s732_s16, %s726_s9 }
  0x68   : > { %v403_v60 = vld [vmem:[#allocation4] sm:$0x1]  ;;  %p729_p8 = pneg %p728_p6 }
  0x69   : > { %p735_p0 = por %p734_p11, %p733_p12 }
  0x6b   : > { %p736_p5 = pnand %p735_p0, %p729_p8 }
 0x139   : > { %v343_v7 = vpop.f32.mrb[0].mxu0 }
 0x13a   : > { %v344_v8 = vadd.f32 %v557_v6, %v343_v7  ;;  %v575_v9 = vpop.f32.mrb[1].mxu0 }
 0x13b   : > { %v346_v10 = vpop.f32.mrb[2].mxu0 }
 0x13c   : > { %660 = vtanh.f32 %v344_v8  ;;  %v576_v11 = vpop.f32.mrb[3].mxu0 }
 0x146   : > { %v661_v13 = vpop.eup %660 }
 0x147   : > { %v357_v14 = vmul.f32 %v661_v13, %v561_v12 }
 0x149   : > { %v358_v15 = vsel %vm305_vm2, %v357_v14, 0.0 }
 0x14a   : > { %359 = vadd.xlane.f32.xlu0 %v358_v15 }
 0x1d7   : > { %v360_v18 = vpop.xlane.xlu0 %359 }
 0x1d8   : > { %v368_v19 = vadd.f32 %v562_v17, %v360_v18 }
 0x1da   : > { %v371_v20 = vsel %vm370_vm4, %v368_v19, -inf }
 0x1db   : > { %v372_v21 = vrot.slane %v371_v20, 4 }
 0x1dd   : > { %v373_v23 = vmax.f32 %v371_v20, %v372_v21 }
 0x1df   : > { %v374_v24 = vrot.slane %v373_v23, 2 }
 0x1e1   : > { %v375_v26 = vmax.f32 %v373_v23, %v374_v24 }
 0x1e3   : > { %v376_v27 = vrot.slane %v375_v26, 1 }
 0x1e5   : > { %v377_v30 = vmax.f32 %v375_v26, %v376_v27 }
 0x1e7   : > { %v378_v31 = vmax.f32 %v369_v28, %v377_v30 }
 0x1e9   : > { %v386_v32 = vrot.slane %v378_v31, %v385_v29  ;;  %431 = vst.msk [vmem:[#allocation2] sm:$0x1] %vm276_vm0, %v378_v31  ;;  %v379_v33 = vsub.f32 %v369_v28, %v378_v31 }
 0x1eb   : > { %v388_v34 = vsub.f32 %v368_v19, %v386_v32  ;;  %v380_v35 = vmul.f32 1.442695, %v379_v33 }
 0x1ed   : > { %v389_v36 = vmul.f32 1.442695, %v388_v34  ;;  %662 = vpow2.f32 %v380_v35 }
 0x1ef   : > { %664 = vpow2.f32 %v389_v36 }
 0x1f7   : > { %v663_v37 = vpop.eup %662 }
 0x1f8   : > { %406 = vperm.xlu1 %657, %v663_v37   ;;  %v392_v47 = vmul.f32 %v663_v37, %v391_v44 }
 0x1f9   : > { %v665_v38 = vpop.eup %664 }
 0x1fa   : > { %v393_v39 = vsel %vm370_vm4, %v665_v38, 0.0  ;;  %417 = vperm.xlu0 %656, %v665_v38  }
 0x1fb   : > { %v394_v40 = vrot.slane %v393_v39, 4 }
 0x1fd   : > { %v395_v41 = vadd.f32 %v394_v40, %v393_v39 }
 0x1ff   : > { %v396_v42 = vrot.slane %v395_v41, 2 }
 0x201   : > { %v397_v43 = vadd.f32 %v396_v42, %v395_v41 }
 0x203   : > { %v398_v45 = vrot.slane %v397_v43, 1 }
 0x205   : > { %v399_v46 = vadd.f32 %v398_v45, %v397_v43 }
 0x207   : > { %v400_v48 = vadd.f32 %v399_v46, %v392_v47 }
 0x209   : > { %402 = vst.msk [vmem:[#allocation3] sm:$0x1] %vm276_vm0, %v400_v48 }
 0x210   : > { %v436_v49 = vld [vmem:[#allocation3] sm:$0x1] }
 0x211   : > { %439 = vperm.xlu1 %657, %v436_v49  }
 0x277   : > { %v407_v56 = vpop.permute.xlu1 %406 }
 0x278   : > { %v412_v58 = vrot.slane %v407_v56, %v385_v29 }
 0x279   : > { %v418_v51 = vpop.permute.xlu0 %417 }
 0x27a   : > { %v420_v52 = vmul.f32 %v418_v51, %v414_v50  ;;  %v413_v62 = vmul.f32 %v412_v58, %v403_v60 }
 0x27c   : > { %v421_v53 = vsel %vm305_vm2, %v420_v52, 0.0 }
 0x27d   : > { %v422_v54 = vrot.slane %v421_v53, 4 }
 0x27f   : > { %v423_v55 = vadd.f32 %v422_v54, %v421_v53 }
 0x281   : > { %v424_v57 = vrot.slane %v423_v55, 2 }
 0x283   : > { %v425_v59 = vadd.f32 %v424_v57, %v423_v55 }
 0x285   : > { %v426_v61 = vrot.slane %v425_v59, 1 }
 0x287   : > { %v427_v63 = vadd.f32 %v426_v61, %v425_v59 }
 0x289   : > { %v428_v0 = vadd.f32 %v427_v63, %v413_v62 }
 0x28b   : > { %430 = vst.msk [vmem:[#allocation4] sm:$0x1] %vm279_vm3, %v428_v0 }
 0x290   : > { %v440_v1 = vpop.permute.xlu1 %439 }
 0x291   : > { %v445_v2 = vrot.slane %v440_v1, %v385_v29 }
 0x292   : > { %v435_v4 = vld [vmem:[#allocation4] sm:$0x1] }
 0x293   : > { %666 = vrcp.f32 %v445_v2 }
 0x29d   : > { %v667_v3 = vpop.eup %666 }
 0x29e   : > { %v447_v5 = vmul.f32 %v667_v3, %v435_v4 }
 0x2a0   : > { %448 = vst.msk [vmem:[%s270_s26] sm:$0x1] %vm279_vm3, %v447_v5 }
 0x2a1   : > { %739 = shalt.err (!%p736_p5)
}
 0x2a2   : > { %s740_s11 = scalar_lea.hbm %s1043_s18, 16  ;;  %s744_s29 = scalar_lea.hbm %s1098_s5, 32 }
 0x2a3   : > { %p741_p9 = scmp.ne.s32.totalorder %s1043_s18, %s740_s11  ;;  %p745_p7 = scmp.lt.u32.totalorder %s1043_s18, %s1098_s5 }
 0x2a4   : > { %p746_p3 = scmp.lt.u32.totalorder %s744_s29, %s740_s11  ;;  %p748_p13 = scmp.lt.u32.totalorder %s740_s11, %s1043_s18 }
 0x2a5   : > { %p742_p1 = pnand %p741_p9, %p952_p10 }
 0x2a6   : > { %p747_p4 = por %p746_p3, %p745_p7 }
 0x2a7   : > { %p743_p2 = pneg %p742_p1 }
 0x2a8   : > { %p749_p6 = por %p748_p13, %p747_p4 }
 0x2aa   : > { %p750_p8 = pnand %p749_p6, %p743_p2 }
 0x2ac   : > { %753 = shalt.err (!%p750_p8)
}
 0x2ad   : > { %583 = dma.vmem_to_hbm [thread:$0]  (%p952_p10), %s1045_s7, 16, %s1043_s18, %s450_s28  }
 0x2ae PF: > { %s474_s4 = sand.u32 1, %s792_s20   ;;  %p1116_p12 = scmp.ne.s32.totalorder %s1106_s30, 0 }
 0x2af   : > { %p1117_p11 = scmp.ge.s32.totalorder %s812_s25, 2  ;;  %s475_s26 = scalar_lea.sflag [#allocation8], %s474_s4 }
 0x2b1   : > { %p594_p0 = pnand %p1117_p11, %p1116_p12 }
 0x2b3   : > { %787 = dma.done.wait (!%p594_p0), %s475_s26, 16  }
 0x2b4   : > { %789 = vsyncadd (!%p594_p0), %s475_s26, 4294967280  ;;  %s24_s25 = sadd.s32 1, %s812_s25   ;;  %s1118_s20 = smov %s796_s21 }
 0x2b5   : > { %p21_p5 = scmp.ge.s32.totalorder %s24_s25, 4   ;;  %s1119_s21 = smov %s800_s22 }
 0x2b6   : > { %s1120_s22 = smov %s961_s15  ;;  %s1121_s23 = smov %s808_s24 }
 0x2b7   : > { %s1122_s24 = smov %s1124_s10  ;;  %23 = sbr.rel (!%p21_p5) target bundleno = 10 (0xa), region = 97 }
 0x2be   :  { %479 = vsyncpa [#allocation7], 1 }
 0x2bf   :  { %481 = vsyncpa [#allocation7 + $0x1], 1 }
 0x2c0   :  { %482 = vsyncpa [#allocation10], 1 }
 0x2c1   :  { %483 = vsyncpa [#allocation8], 1 }
 0x2c2   :  { %485 = vsyncpa [#allocation8 + $0x1], 1 }

</bundles_post_ra>
